<compile_context>
chip_gen: v5e
topology: v5e:2x2
jax: 0.10.0
libtpu: 0.0.40
codegen_flags: <defaults>
</compile_context>

<pallas_src>
import jax
import jax.numpy as jnp
from jax.experimental import pallas as pl
from jax.experimental.pallas import tpu as pltpu

_FEATURES = 8                 # fixed by the module: nn.Linear(8, 8, bias=False)
_PACK = 128 // _FEATURES      # 16 original rows packed into one 128-lane row
_WIDTH = _PACK * _FEATURES    # 128
_ROW_TILE = 4096              # packed rows per grid step (4096*128*4B = 2 MiB)
_MIN_GRID_STEPS = 4           # keep >=4 steps when possible (v7x: 2 TensorCores)


def _mlp_folded_kernel(x_ref, w_ref, o_ref):
    """One lane-dense MXU matmul per tile: (tile, 128) @ (128, 128)."""
    o_ref[...] = jnp.dot(
        x_ref[...], w_ref[...], preferred_element_type=jnp.float32
    ).astype(o_ref.dtype)


def _fold_weights(weights):
    """Collapse the linear chain: y = x @ W_0^T @ ... @ W_{L-1}^T = x @ W_eff."""
    w_eff = weights[0].T.astype(jnp.float32)
    for i in range(1, weights.shape[0]):                     # static, tiny L
        w_eff = jnp.dot(w_eff, weights[i].T.astype(jnp.float32),
                        preferred_element_type=jnp.float32)
    return w_eff                                             # (8, 8)


def _sublane_multiple(dtype):
    """Native second-to-last tile multiple: 8 (32-bit), 16 (16-bit), 32 (8-bit)."""
    itemsize = jnp.dtype(dtype).itemsize
    return max(8, 32 // itemsize)


def _pack_activations(x2d):
    """(N, 8) row-major -> (R, 128), 16 consecutive rows per packed row."""
    n = x2d.shape[0]
    n_full = pl.cdiv(n, _PACK) * _PACK
    if n_full != n:                                          # guard: skip no-op pad
        x2d = jnp.pad(x2d, ((0, n_full - n), (0, 0)))
    return x2d.reshape(n_full // _PACK, _WIDTH)


def mlp_forward_packed(x_packed, weights, *, row_tile=_ROW_TILE):
    """Fast path: activations already lane-packed as (R, 128).

    Keeps data packed so callers composing several pallas_calls avoid the
    (..., 8) <-> (R, 128) relayout around every invocation.
    """
    r, width = x_packed.shape
    assert width == _WIDTH, "packed activations must be (R, 128)"

    # Fold the layer chain and block-diagonalise so the contraction is 128.
    w_eff = _fold_weights(weights)                                   # (8, 8)
    w_block = jnp.kron(jnp.eye(_PACK, dtype=jnp.float32), w_eff)     # (128, 128)
    w_block = w_block.astype(x_packed.dtype)

    # Tile selection: as large as possible (HBM-streaming efficiency) but
    # capped so the grid has >= _MIN_GRID_STEPS steps (v7x megacore sharding),
    # rounded to the dtype-native sublane multiple.
    sub_mult = _sublane_multiple(x_packed.dtype)
    tile_cap = ((pl.cdiv(r, _MIN_GRID_STEPS) + sub_mult - 1) // sub_mult) * sub_mult
    tile = max(sub_mult, min(row_tile, tile_cap))

    r_pad = pl.cdiv(r, tile) * tile
    if r_pad != r:                                           # guard: skip no-op pad
        x_packed = jnp.pad(x_packed, ((0, r_pad - r), (0, 0)))

    grid = (r_pad // tile,)
    out_packed = pl.pallas_call(
        _mlp_folded_kernel,
        out_shape=jax.ShapeDtypeStruct((r_pad, width), x_packed.dtype),
        grid=grid,
        in_specs=[
            # Activations stream through; weights keep a constant block index
            # so they stay resident in VMEM across grid steps.
            pl.BlockSpec((tile, width), lambda i: (i, 0)),
            pl.BlockSpec((width, width), lambda i: (0, 0)),
        ],
        out_specs=pl.BlockSpec((tile, width), lambda i: (i, 0)),
        compiler_params=pltpu.CompilerParams(
            dimension_semantics=("parallel",),     # shard rows across TCs (v7x)
            vmem_limit_bytes=32 * 1024 * 1024,     # ~8 MiB used at tile=4096 f32
            allow_input_fusion=[True, False],      # let XLA fuse the pack relayout
        ),
    )(x_packed, w_block)

    if r_pad != r:
        out_packed = out_packed[:r]
    return out_packed


def mlp_model_forward(input_ids, weights, *, row_tile=_ROW_TILE):
    """Pallas equivalent of MlpModel.forward (embedding=False, start=0).

    input_ids: (..., 8) array
    weights:   (L, 8, 8); weights[i] == blocks[i].weight (out_features, in_features)
    """
    # TODO(synk): the embedding=True reshape branch and the start!=0
    # hidden_states aliasing are not exercised by the tested configuration
    # and are not implemented.
    orig_shape = input_ids.shape
    d = orig_shape[-1]
    assert d == _FEATURES, "MlpModel is hard-wired to Linear(8, 8)"

    x2d = input_ids.reshape(-1, d)                           # (N, 8), row-major
    n = x2d.shape[0]

    x_packed = _pack_activations(x2d)                        # (R, 128)
    out_packed = mlp_forward_packed(x_packed, weights, row_tile=row_tile)

    out2d = out_packed.reshape(-1, d)
    if out2d.shape[0] != n:
        out2d = out2d[:n]
    return out2d.reshape(orig_shape)


def init_weights(key, num_layers, dim=_FEATURES):
    """Deterministic stand-in for nn.Linear default init (uniform +-1/sqrt(in))."""
    bound = 1.0 / jnp.sqrt(dim)
    return jax.random.uniform(
        key, (num_layers, dim, dim), dtype=jnp.float32, minval=-bound, maxval=bound
    )


def _reference_chain(x, weights):
    ref = x
    for i in range(weights.shape[0]):
        ref = jnp.dot(ref, weights[i].T)
    return ref


if __name__ == "__main__":
    key = jax.random.PRNGKey(0)
    k_x, k_w, k_x2 = jax.random.split(key, 3)

    # MlpModel(start=0, end=4): 4 Linear(8, 8, bias=False) blocks.
    start, end = 0, 4
    num_layers = end - start

    # Small test shape consistent with the module (hidden must be 8).
    batch, seq, hidden = 2, 8, 8
    input_ids = jax.random.normal(k_x, (batch, seq, hidden), dtype=jnp.float32)
    weights = init_weights(k_w, num_layers, hidden)

    out = mlp_model_forward(input_ids, weights)
    out = jax.block_until_ready(out)

    ref = _reference_chain(input_ids, weights)
    assert out.shape == input_ids.shape
    assert jnp.allclose(out, ref, atol=1e-4, rtol=1e-4), "mismatch vs reference"

    # Second check exercising the multi-tile (pipelined, parallel-grid) path.
    x_big = jax.random.normal(k_x2, (2, 8192, hidden), dtype=jnp.float32)
    out_big = jax.block_until_ready(mlp_model_forward(x_big, weights))
    ref_big = _reference_chain(x_big, weights)
    assert jnp.allclose(out_big, ref_big, atol=1e-4, rtol=1e-4), "mismatch (tiled)"

    # Third check: packed fast-path API with an unaligned row count.
    x_odd = jax.random.normal(k_x, (3, 37, hidden), dtype=jnp.float32)
    out_odd = jax.block_until_ready(mlp_model_forward(x_odd, weights))
    ref_odd = _reference_chain(x_odd, weights)
    assert jnp.allclose(out_odd, ref_odd, atol=1e-4, rtol=1e-4), "mismatch (odd N)"

    print("KERNEL_OK")
</pallas_src>

<mosaic_0001>
module attributes {stable_mosaic.version = 11 : i64} {
  func.func @_mlp_folded_kernel(%arg0: i32, %arg1: memref<8x128xf32, #tpu.memory_space<vmem>>, %arg2: memref<128x128xf32, #tpu.memory_space<vmem>>, %arg3: memref<8x128xf32, #tpu.memory_space<vmem>>) attributes {dimension_semantics = [#tpu.dimension_semantics<parallel>], iteration_bounds = array<i64: 1>, scalar_prefetch = 0 : i64, scratch_operands = 0 : i64, tpu.core_type = #tpu.core_type<tc>, window_params = [{transform_indices = @transform_0, window_bounds = array<i64: 8, 128>}, {pipeline_mode = #tpu.pipeline_mode<synchronous>, transform_indices = @transform_1, window_bounds = array<i64: 128, 128>}, {transform_indices = @transform_2, window_bounds = array<i64: 8, 128>}]} {
    %c0 = arith.constant 0 : index
    %c0_0 = arith.constant 0 : index
    %0 = vector.load %arg1[%c0, %c0_0] : memref<8x128xf32, #tpu.memory_space<vmem>>, vector<8x128xf32>
    %c0_1 = arith.constant 0 : index
    %c0_2 = arith.constant 0 : index
    %1 = vector.load %arg2[%c0_1, %c0_2] : memref<128x128xf32, #tpu.memory_space<vmem>>, vector<128x128xf32>
    %cst = arith.constant dense<0.000000e+00> : vector<8x128xf32>
    %2 = tpu.matmul %0, %1, %cst {dimension_numbers = #tpu.dot_dimension_numbers<[1], [0], [0], [1], [0, 0, 1, 1], [], []>} : vector<8x128xf32>, vector<128x128xf32>, vector<8x128xf32> -> vector<8x128xf32>
    %c0_3 = arith.constant 0 : index
    %c0_4 = arith.constant 0 : index
    %3 = vector.load %arg3[%c0_3, %c0_4] : memref<8x128xf32, #tpu.memory_space<vmem>>, vector<8x128xf32>
    tpu.vector_store %arg3[%c0_3, %c0_4], %2 {strides = array<i32>} : memref<8x128xf32, #tpu.memory_space<vmem>>, vector<8x128xf32>,
    return
  }
  func.func @transform_0(%arg0: i32) -> (i32, i32) {
    %c0_i32 = arith.constant 0 : i32
    %c0_i32_0 = arith.constant 0 : i32
    return %arg0, %c0_i32 : i32, i32
  }
  func.func @transform_1(%arg0: i32) -> (i32, i32) {
    %c0_i32 = arith.constant 0 : i32
    %c0_i32_0 = arith.constant 0 : i32
    %c0_i32_1 = arith.constant 0 : i32
    return %c0_i32, %c0_i32_0 : i32, i32
  }
  func.func @transform_2(%arg0: i32) -> (i32, i32) {
    %c0_i32 = arith.constant 0 : i32
    %c0_i32_0 = arith.constant 0 : i32
    return %arg0, %c0_i32 : i32, i32
  }
}

</mosaic_0001>

<bundles_post_ra>
// kernel: tpu_custom_call.1
= control target key start
LH: loop header
LB: loop body
LE: loop exit
PB: predicated region body
PF: predicated region fallthrough
CT: control target
= control target key end

     0   :  { %7 = vsyncpa [#allocation3], 0  ;;  %s210_s0 = inlined_call_operand.hbm [shape: f32[8,128], index: 0, kind: input, shape index: {}]   ;;  %s211_s1 = inlined_call_operand.hbm [shape: f32[128,128], index: 1, kind: input, shape index: {}]   ;;  %s212_s2 = inlined_call_operand.hbm [shape: f32[8,128], index: 2, kind: output, shape index: {}]  }
   0x1   :  { %8 = vsyncpa [#allocation6], 0 }
   0x2   :  { %9 = vsyncpa [#allocation4], 0  ;;  %s15_s11 = sshll.u32 %s210_s0, 4  ;;  %s181_s12 = smov [#allocation2]   ;;  %s16_s11 = int_to_ptr.hbm [resolvable:$true] %s15_s11 }
   0x3   :  { %s17_s13 = sshll.u32 %s181_s12, 4  ;;  %s25_s16 = sshll.u32 %s211_s1, 4  ;;  %s18_s13 = int_to_ptr.vmem [resolvable:$true] %s17_s13  ;;  %s26_s16 = int_to_ptr.hbm [resolvable:$true] %s25_s16 }
   0x4   :  { %20 = dma.hbm_to_vmem [thread:$0]  %s16_s11, 128, %s18_s13, [#allocation3]  }
   0x5   :  { %s182_s17 = smov [#allocation5]   ;;  %s183_s19 = smov 128  }
   0x6   :  { %s27_s18 = sshll.u32 %s182_s17, 4  ;;  %s184_s20 = smov 8   ;;  %s28_s18 = int_to_ptr.vmem [resolvable:$true] %s27_s18 }
   0x7   :  { %33 = dma.hbm_to_vmem [thread:$0]  %s26_s16, 2048, %s28_s18, [#allocation6], %s183_s19, %s183_s19, %s184_s20  }
   0x8   :  { %175 = dma.done.wait [#allocation3], 128  }
   0x9   :  { %176 = vsyncadd [#allocation3], 4294967168 }
   0xa   :  { %177 = dma.done.wait [#allocation6], 2048  }
   0xb   :  { %178 = vsyncadd [#allocation6], 4294965248  ;;  %v58_v0 = vld [vmem:[#allocation5 + $0x78] sm:$0xff]  ;;  %v57_v1 = vld [vmem:[#allocation5 + $0x70] sm:$0xff]  ;;  %s185_s0 = smov [#allocation7]   ;;  %s87_s23 = sshll.u32 %s212_s2, 4  ;;  %s88_s23 = int_to_ptr.hbm [resolvable:$true] %s87_s23 }
   0xc   :  { %59 = vmatpush.msra.mxu0 %v58_v0  ;;  %v56_v2 = vld [vmem:[#allocation5 + $0x68] sm:$0xff]  ;;  %v55_v3 = vld [vmem:[#allocation5 + $0x60] sm:$0xff]  ;;  %v54_v4 = vld [vmem:[#allocation5 + $0x58] sm:$0xff]  ;;  %s85_s1 = sshll.u32 %s185_s0, 4  ;;  %s86_s1 = int_to_ptr.vmem [resolvable:$true] %s85_s1 }
   0xd   :  { %v53_v5 = vld [vmem:[#allocation5 + $0x50] sm:$0xff]  ;;  %v52_v6 = vld [vmem:[#allocation5 + $0x48] sm:$0xff]  ;;  %v51_v7 = vld [vmem:[#allocation5 + $0x40] sm:$0xff] }
   0xe   :  { %60 = vmatpush.msra.mxu0 %v57_v1  ;;  %v50_v8 = vld [vmem:[#allocation5 + $0x38] sm:$0xff]  ;;  %v49_v9 = vld [vmem:[#allocation5 + $0x30] sm:$0xff]  ;;  %v48_v10 = vld [vmem:[#allocation5 + $0x28] sm:$0xff] }
   0xf   :  { %v47_v11 = vld [vmem:[#allocation5 + $0x20] sm:$0xff]  ;;  %v46_v12 = vld [vmem:[#allocation5 + $0x18] sm:$0xff]  ;;  %v45_v13 = vld [vmem:[#allocation5 + $0x10] sm:$0xff] }
  0x10   :  { %61 = vmatpush.msra.mxu0 %v56_v2  ;;  %v44_v14 = vld [vmem:[#allocation5 + $0x8] sm:$0xff]  ;;  %v43_v15 = vld [vmem:[#allocation5] sm:$0xff]  ;;  %v42_v16 = vld [vmem:[#allocation2] sm:$0xff] }
  0x12   :  { %62 = vmatpush.msra.mxu0 %v55_v3 }
  0x14   :  { %63 = vmatpush.msra.mxu0 %v54_v4 }
  0x16   :  { %64 = vmatpush.msra.mxu0 %v53_v5 }
  0x18   :  { %65 = vmatpush.msra.mxu0 %v52_v6 }
  0x1a   :  { %66 = vmatpush.msra.mxu0 %v51_v7 }
  0x1c   :  { %67 = vmatpush.msra.mxu0 %v50_v8 }
  0x1e   :  { %68 = vmatpush.msra.mxu0 %v49_v9 }
  0x20   :  { %69 = vmatpush.msra.mxu0 %v48_v10 }
  0x22   :  { %70 = vmatpush.msra.mxu0 %v47_v11 }
  0x24   :  { %71 = vmatpush.msra.mxu0 %v46_v12 }
  0x26   :  { %72 = vmatpush.msra.mxu0 %v45_v13 }
  0x28   :  { %73 = vmatpush.msra.mxu0 %v44_v14 }
  0x2a   :  { %74 = vmatpush.msra.mxu0 %v43_v15 }
  0x2b   :  { %75 = vmatmul.f32.vlgmr.msra.gmra.mxu0 %v42_v16 }
  0xa8   :  { %v76_v17 = vpop.f32.mrf.mxu0 }
  0xa9   :  { %79 = vst [vmem:[#allocation7] sm:$0xff] %v76_v17 }
  0xaa   :  { %90 = dma.vmem_to_hbm [thread:$0]  %s86_s1, 128, %s88_s23, [#allocation4]  }
  0xab   :  { %179 = dma.done.wait [#allocation4], 128  }
  0xac   :  { %180 = vsyncadd [#allocation4], 4294967168 }
  0xad   :  { %95 = vsyncpa [#allocation3], 1 }
  0xae   :  { %96 = vsyncpa [#allocation6], 1 }
  0xaf   :  { %97 = vsyncpa [#allocation4], 1 }

</bundles_post_ra>
